<compile_context>
chip_gen: v7x
topology: tpu7x:2x2x1
jax: 0.10.0
libtpu: 0.0.40
codegen_flags: <defaults>
</compile_context>

<pallas_src>
import functools

import jax
import jax.numpy as jnp
from jax.experimental import pallas as pl
from jax.experimental.pallas import tpu as pltpu


def _round_up(n, m):
    return (n + m - 1) // m * m


def sae_fwd_kernel(x_ref, w_enc_ref, b_enc_ref, w_dec_ref, b_dec_ref,
                   recon_ref, hidden_ref, *, compute_dtype):
    """One batch-tile of the sparse-autoencoder forward pass.

    x_ref:      (tb, Dp)   input tile (f32)
    w_enc_ref:  (Dp, Hp)   encoder weight (pre-transposed, compute_dtype)
    b_enc_ref:  (1, Hp)    encoder bias (f32)
    w_dec_ref:  (Hp, Dp)   decoder weight (pre-transposed, compute_dtype)
    b_dec_ref:  (1, Dp)    decoder bias (f32)
    recon_ref:  (tb, Dp)   output: reconstruction
    hidden_ref: (tb, Hp)   output: hidden activations (post-ReLU)
    """
    x = x_ref[...].astype(compute_dtype)

    # Encoder: MXU matmul (f32 accumulation) + f32 bias/ReLU on the VPU.
    h = jnp.dot(x, w_enc_ref[...], preferred_element_type=jnp.float32)
    h = jnp.maximum(h + b_enc_ref[...], 0.0)
    hidden_ref[...] = h.astype(hidden_ref.dtype)

    # Decoder: MXU matmul (f32 accumulation) + f32 bias.
    r = jnp.dot(h.astype(compute_dtype), w_dec_ref[...],
                preferred_element_type=jnp.float32)
    recon_ref[...] = (r + b_dec_ref[...]).astype(recon_ref.dtype)


@functools.partial(jax.jit, static_argnames=("tb", "compute_dtype"))
def sparse_autoencoder_forward(x, w_enc, b_enc, w_dec, b_dec, *, tb=256,
                               compute_dtype=jnp.float32):
    """x: [B, D] float32. Returns (reconstructed [B, D], hidden [B, H])."""
    B, D = x.shape
    H = w_enc.shape[1]

    # Lane-dense padding: last dims become multiples of 128 (unmasked vst).
    Dp = _round_up(D, 128)
    Hp = _round_up(H, 128)
    # Batch tile: as large as requested but never larger than the padded batch;
    # keep it a multiple of 8 (f32 sublanes).
    tb_eff = min(tb, _round_up(B, 8))
    Bp = _round_up(B, tb_eff)
    grid = (Bp // tb_eff,)

    # Zero padding keeps semantics exact (padded hidden units are ReLU(0)=0 and
    # contribute nothing to the decoder); outputs are sliced back afterwards.
    xp = jnp.pad(x, ((0, Bp - B), (0, Dp - D)))
    w_enc_p = jnp.pad(w_enc, ((0, Dp - D), (0, Hp - H))).astype(compute_dtype)
    b_enc_p = jnp.pad(b_enc, ((0, 0), (0, Hp - H)))
    w_dec_p = jnp.pad(w_dec, ((0, Hp - H), (0, Dp - D))).astype(compute_dtype)
    b_dec_p = jnp.pad(b_dec, ((0, 0), (0, Dp - D)))

    # Explicit VMEM budget: double-buffered activation tiles + (double-buffered
    # by default) resident weights + headroom; floor 16 MiB, cap below v7x's
    # 64 MiB physical VMEM.
    act_itemsize = jnp.dtype(x.dtype).itemsize
    w_itemsize = jnp.dtype(compute_dtype).itemsize
    act_bytes = 2 * tb_eff * (2 * Dp + Hp) * act_itemsize
    wgt_bytes = 2 * ((Dp * Hp + Hp * Dp) * w_itemsize
                     + (Hp + Dp) * act_itemsize)
    vmem_limit = int(min(max(act_bytes + wgt_bytes + (8 << 20), 16 << 20),
                         48 << 20))

    out_shapes = (
        jax.ShapeDtypeStruct((Bp, Dp), x.dtype),   # reconstructed (padded)
        jax.ShapeDtypeStruct((Bp, Hp), x.dtype),   # hidden (padded)
    )
    recon_p, hidden_p = pl.pallas_call(
        functools.partial(sae_fwd_kernel, compute_dtype=compute_dtype),
        out_shape=out_shapes,
        grid_spec=pltpu.PrefetchScalarGridSpec(
            num_scalar_prefetch=0,
            grid=grid,
            in_specs=[
                pl.BlockSpec((tb_eff, Dp), lambda i: (i, 0)),  # x tile (streams)
                pl.BlockSpec((Dp, Hp), lambda i: (0, 0)),      # W_enc (resident)
                pl.BlockSpec((1, Hp), lambda i: (0, 0)),       # b_enc
                pl.BlockSpec((Hp, Dp), lambda i: (0, 0)),      # W_dec (resident)
                pl.BlockSpec((1, Dp), lambda i: (0, 0)),       # b_dec
            ],
            out_specs=[
                pl.BlockSpec((tb_eff, Dp), lambda i: (i, 0)),  # reconstructed
                pl.BlockSpec((tb_eff, Hp), lambda i: (i, 0)),  # hidden
            ],
        ),
        compiler_params=pltpu.CompilerParams(
            dimension_semantics=("parallel",),
            vmem_limit_bytes=vmem_limit),
    )(xp, w_enc_p, b_enc_p, w_dec_p, b_dec_p)

    return recon_p[:B, :D], hidden_p[:B, :H]


def kl_divergence(rho, rho_hat):
    """Matches SparseAutoencoder.kl_divergence (plain JAX glue, not hot path)."""
    eps = 1e-10
    return jnp.sum(rho * jnp.log((rho + eps) / (rho_hat + eps))
                   + (1 - rho) * jnp.log((1 - rho + eps) / (1 - rho_hat + eps)))


def init_params(key, input_dim, hidden_dim, dtype=jnp.float32):
    """Deterministic init mimicking nn.Linear (uniform(-1/sqrt(fan_in), ...)).

    Weights are returned already transposed to [in_features, out_features].
    """
    k1, k2, k3, k4 = jax.random.split(key, 4)
    bound_enc = 1.0 / jnp.sqrt(jnp.array(input_dim, dtype))
    bound_dec = 1.0 / jnp.sqrt(jnp.array(hidden_dim, dtype))
    w_enc = jax.random.uniform(k1, (input_dim, hidden_dim), dtype,
                               -bound_enc, bound_enc)
    b_enc = jax.random.uniform(k2, (1, hidden_dim), dtype,
                               -bound_enc, bound_enc)
    w_dec = jax.random.uniform(k3, (hidden_dim, input_dim), dtype,
                               -bound_dec, bound_dec)
    b_dec = jax.random.uniform(k4, (1, input_dim), dtype,
                               -bound_dec, bound_dec)
    return w_enc, b_enc, w_dec, b_dec


if __name__ == "__main__":
    batch = 8
    input_dim = 256
    hidden_dim = 64
    rho = 0.05

    key = jax.random.PRNGKey(0)
    kx, kp = jax.random.split(key)
    x = jax.random.normal(kx, (batch, input_dim), jnp.float32)
    w_enc, b_enc, w_dec, b_dec = init_params(kp, input_dim, hidden_dim)

    # Pure-JAX reference.
    h_ref = jnp.maximum(x @ w_enc + b_enc, 0.0)
    r_ref = h_ref @ w_dec + b_dec

    # f32 path (default): exact match within fp32 tolerance.
    reconstructed, hidden = sparse_autoencoder_forward(
        x, w_enc, b_enc, w_dec, b_dec)
    jax.block_until_ready((reconstructed, hidden))
    assert jnp.allclose(hidden, h_ref, atol=1e-5, rtol=1e-5)
    assert jnp.allclose(reconstructed, r_ref, atol=1e-5, rtol=1e-5)

    # bf16 MXU path (the v6e/v7x perf lever): looser tolerance.
    recon_bf16, hidden_bf16 = sparse_autoencoder_forward(
        x, w_enc, b_enc, w_dec, b_dec, compute_dtype=jnp.bfloat16)
    jax.block_until_ready((recon_bf16, hidden_bf16))
    assert jnp.allclose(hidden_bf16, h_ref, atol=5e-2, rtol=5e-2)
    assert jnp.allclose(recon_bf16, r_ref, atol=5e-2, rtol=5e-2)

    # Exercise the sparsity penalty path (plain JAX, same semantics as module).
    rho_hat = jnp.mean(hidden, axis=0)
    _ = jax.block_until_ready(kl_divergence(rho, rho_hat))

    print("KERNEL_OK")
</pallas_src>

<mosaic_0001>
module attributes {stable_mosaic.version = 11 : i64} {
  func.func @sae_fwd_kernel(%arg0: i32, %arg1: memref<8x256xf32, #tpu.memory_space<vmem>>, %arg2: memref<256x128xf32, #tpu.memory_space<vmem>>, %arg3: memref<1x128xf32, #tpu.memory_space<vmem>>, %arg4: memref<128x256xf32, #tpu.memory_space<vmem>>, %arg5: memref<1x256xf32, #tpu.memory_space<vmem>>, %arg6: memref<8x256xf32, #tpu.memory_space<vmem>>, %arg7: memref<8x128xf32, #tpu.memory_space<vmem>>) attributes {dimension_semantics = [#tpu.dimension_semantics<parallel>], iteration_bounds = array<i64: 1>, scalar_prefetch = 0 : i64, scratch_operands = 0 : i64, tpu.core_type = #tpu.core_type<tc>, window_params = [{transform_indices = @transform_0, window_bounds = array<i64: 8, 256>}, {pipeline_mode = #tpu.pipeline_mode<synchronous>, transform_indices = @transform_1, window_bounds = array<i64: 256, 128>}, {pipeline_mode = #tpu.pipeline_mode<synchronous>, transform_indices = @transform_2, window_bounds = array<i64: 1, 128>}, {pipeline_mode = #tpu.pipeline_mode<synchronous>, transform_indices = @transform_3, window_bounds = array<i64: 128, 256>}, {pipeline_mode = #tpu.pipeline_mode<synchronous>, transform_indices = @transform_4, window_bounds = array<i64: 1, 256>}, {transform_indices = @transform_5, window_bounds = array<i64: 8, 256>}, {transform_indices = @transform_6, window_bounds = array<i64: 8, 128>}]} {
    %c0 = arith.constant 0 : index
    %c0_0 = arith.constant 0 : index
    %0 = vector.load %arg1[%c0, %c0_0] : memref<8x256xf32, #tpu.memory_space<vmem>>, vector<8x256xf32>
    %c0_1 = arith.constant 0 : index
    %c0_2 = arith.constant 0 : index
    %1 = vector.load %arg2[%c0_1, %c0_2] : memref<256x128xf32, #tpu.memory_space<vmem>>, vector<256x128xf32>
    %cst = arith.constant dense<0.000000e+00> : vector<8x128xf32>
    %2 = tpu.matmul %0, %1, %cst {dimension_numbers = #tpu.dot_dimension_numbers<[1], [0], [0], [1], [0, 0, 1, 1], [], []>} : vector<8x256xf32>, vector<256x128xf32>, vector<8x128xf32> -> vector<8x128xf32>
    %c0_3 = arith.constant 0 : index
    %c0_4 = arith.constant 0 : index
    %3 = vector.load %arg3[%c0_3, %c0_4] : memref<1x128xf32, #tpu.memory_space<vmem>>, vector<1x128xf32>
    %4 = vector.broadcast %3 : vector<1x128xf32> to vector<8x128xf32>
    %5 = arith.addf %2, %4 : vector<8x128xf32>
    %cst_5 = arith.constant 0.000000e+00 : f32
    %6 = vector.broadcast %cst_5 : f32 to vector<8x128xf32>
    %7 = arith.maximumf %5, %6 : vector<8x128xf32>
    %c0_6 = arith.constant 0 : index
    %c0_7 = arith.constant 0 : index
    %8 = vector.load %arg7[%c0_6, %c0_7] : memref<8x128xf32, #tpu.memory_space<vmem>>, vector<8x128xf32>
    tpu.vector_store %arg7[%c0_6, %c0_7], %7 {strides = array<i32>} : memref<8x128xf32, #tpu.memory_space<vmem>>, vector<8x128xf32>,
    %c0_8 = arith.constant 0 : index
    %c0_9 = arith.constant 0 : index
    %9 = vector.load %arg4[%c0_8, %c0_9] : memref<128x256xf32, #tpu.memory_space<vmem>>, vector<128x256xf32>
    %cst_10 = arith.constant dense<0.000000e+00> : vector<8x256xf32>
    %10 = tpu.matmul %7, %9, %cst_10 {dimension_numbers = #tpu.dot_dimension_numbers<[1], [0], [0], [1], [0, 0, 1, 1], [], []>} : vector<8x128xf32>, vector<128x256xf32>, vector<8x256xf32> -> vector<8x256xf32>
    %c0_11 = arith.constant 0 : index
    %c0_12 = arith.constant 0 : index
    %11 = vector.load %arg5[%c0_11, %c0_12] : memref<1x256xf32, #tpu.memory_space<vmem>>, vector<1x256xf32>
    %12 = vector.broadcast %11 : vector<1x256xf32> to vector<8x256xf32>
    %13 = arith.addf %10, %12 : vector<8x256xf32>
    %c0_13 = arith.constant 0 : index
    %c0_14 = arith.constant 0 : index
    %14 = vector.load %arg6[%c0_13, %c0_14] : memref<8x256xf32, #tpu.memory_space<vmem>>, vector<8x256xf32>
    tpu.vector_store %arg6[%c0_13, %c0_14], %13 {strides = array<i32>} : memref<8x256xf32, #tpu.memory_space<vmem>>, vector<8x256xf32>,
    return
  }
  func.func @transform_0(%arg0: i32) -> (i32, i32) {
    %c0_i32 = arith.constant 0 : i32
    %c0_i32_0 = arith.constant 0 : i32
    return %arg0, %c0_i32 : i32, i32
  }
  func.func @transform_1(%arg0: i32) -> (i32, i32) {
    %c0_i32 = arith.constant 0 : i32
    %c0_i32_0 = arith.constant 0 : i32
    %c0_i32_1 = arith.constant 0 : i32
    return %c0_i32, %c0_i32_0 : i32, i32
  }
  func.func @transform_2(%arg0: i32) -> (i32, i32) {
    %c0_i32 = arith.constant 0 : i32
    %c0_i32_0 = arith.constant 0 : i32
    %c0_i32_1 = arith.constant 0 : i32
    return %c0_i32, %c0_i32_0 : i32, i32
  }
  func.func @transform_3(%arg0: i32) -> (i32, i32) {
    %c0_i32 = arith.constant 0 : i32
    %c0_i32_0 = arith.constant 0 : i32
    %c0_i32_1 = arith.constant 0 : i32
    return %c0_i32, %c0_i32_0 : i32, i32
  }
  func.func @transform_4(%arg0: i32) -> (i32, i32) {
    %c0_i32 = arith.constant 0 : i32
    %c0_i32_0 = arith.constant 0 : i32
    %c0_i32_1 = arith.constant 0 : i32
    return %c0_i32, %c0_i32_0 : i32, i32
  }
  func.func @transform_5(%arg0: i32) -> (i32, i32) {
    %c0_i32 = arith.constant 0 : i32
    %c0_i32_0 = arith.constant 0 : i32
    return %arg0, %c0_i32 : i32, i32
  }
  func.func @transform_6(%arg0: i32) -> (i32, i32) {
    %c0_i32 = arith.constant 0 : i32
    %c0_i32_0 = arith.constant 0 : i32
    return %arg0, %c0_i32 : i32, i32
  }
}

</mosaic_0001>

<bundles_post_ra>
// kernel: sparse_autoencoder_forward.1
= control target key start
LH: loop header
LB: loop body
LE: loop exit
PB: predicated region body
PF: predicated region fallthrough
CT: control target
= control target key end

     0   :  { %12 = vsyncpa [#allocation3], 0  ;;  %s699_s0 = inlined_call_operand.vmem [shape: f32[8,256], index: 0, kind: input, shape index: {}]   ;;  %s700_s1 = inlined_call_operand.vmem [shape: f32[256,128], index: 1, kind: input, shape index: {}]   ;;  %s701_s2 = inlined_call_operand.vmem [shape: f32[1,128], index: 2, kind: input, shape index: {}]   ;;  %s702_s3 = inlined_call_operand.vmem [shape: f32[128,256], index: 3, kind: input, shape index: {}]   ;;  %s703_s4 = inlined_call_operand.vmem [shape: f32[1,256], index: 4, kind: input, shape index: {}]   ;;  %s704_s5 = inlined_call_operand.hbm [shape: f32[8,256], index: 5, kind: output, shape index: {0}]   ;;  %s705_s6 = inlined_call_operand.hbm [shape: f32[8,128], index: 6, kind: output, shape index: {1}]  }
   0x1   :  { %v42_v0 = vld [vmem:[%s700_s1 + $0x80] sm:$0xff]  ;;  %v43_v1 = vld [vmem:[%s700_s1 + $0x88] sm:$0xff]  ;;  %v44_v5 = vld [vmem:[%s700_s1 + $0x90] sm:$0xff] }
   0x2   :  { %v26_v2 = vld [vmem:[%s700_s1] sm:$0xff]  ;;  %v318_v3 = vpack.c.bf16 %v43_v1, %v42_v0  ;;  %v27_v4 = vld [vmem:[%s700_s1 + $0x8] sm:$0xff]  ;;  %v45_v6 = vld [vmem:[%s700_s1 + $0x98] sm:$0xff] }
   0x3   :  { %v320_v7 = vpack.c.bf16 %v27_v4, %v26_v2  ;;  %v322_v8 = vpack.c.bf16 %v45_v6, %v44_v5  ;;  %v28_v9 = vld [vmem:[%s700_s1 + $0x10] sm:$0xff]  ;;  %v29_v10 = vld [vmem:[%s700_s1 + $0x18] sm:$0xff]  ;;  %v46_v11 = vld [vmem:[%s700_s1 + $0xa0] sm:$0xff] }
   0x4   :  { %319 = vmatprep.subr.bf16.mxu0 %v318_v3  ;;  %v47_v12 = vld [vmem:[%s700_s1 + $0xa8] sm:$0xff]  ;;  %v324_v13 = vpack.c.bf16 %v29_v10, %v28_v9  ;;  %v30_v15 = vld [vmem:[%s700_s1 + $0x20] sm:$0xff]  ;;  %v48_v17 = vld [vmem:[%s700_s1 + $0xb0] sm:$0xff] }
   0x5   :  { %321 = vmatpush3.bf16.msra.mxu0 %v320_v7  ;;  %v326_v14 = vpack.c.bf16 %v47_v12, %v46_v11  ;;  %v31_v16 = vld [vmem:[%s700_s1 + $0x28] sm:$0xff]  ;;  %v49_v18 = vld [vmem:[%s700_s1 + $0xb8] sm:$0xff]  ;;  %v32_v21 = vld [vmem:[%s700_s1 + $0x30] sm:$0xff] }
   0x6   :  { %323 = vmatprep.subr.bf16.mxu0 %v322_v8  ;;  %v328_v19 = vpack.c.bf16 %v31_v16, %v30_v15  ;;  %v330_v20 = vpack.c.bf16 %v49_v18, %v48_v17  ;;  %v33_v22 = vld [vmem:[%s700_s1 + $0x38] sm:$0xff]  ;;  %v50_v23 = vld [vmem:[%s700_s1 + $0xc0] sm:$0xff]  ;;  %v51_v24 = vld [vmem:[%s700_s1 + $0xc8] sm:$0xff] }
   0x7   :  { %v25_v25 = vld [vmem:[%s699_s0 + $0x8] sm:$0xff]  ;;  %v34_v26 = vld [vmem:[%s700_s1 + $0x40] sm:$0xff]  ;;  %v140_v29 = vld [vmem:[%s702_s3 + $0x18] sm:$0xff]  ;;  %v332_v30 = vpack.c.bf16 %v33_v22, %v32_v21  ;;  %v334_v36 = vpack.c.bf16 %v51_v24, %v50_v23 }
   0x8   :  { %v35_v27 = vld [vmem:[%s700_s1 + $0x48] sm:$0xff]  ;;  %129 = vmatprep.mubr.f32.mxu0 %v25_v25  ;;  %v52_v31 = vld [vmem:[%s700_s1 + $0xd0] sm:$0xff]  ;;  %v137_v33 = vld [vmem:[%s702_s3] sm:$0xff] }
   0x9   :  { %325 = vmatpush3.bf16.msra.mxu0 %v324_v13  ;;  %v138_v28 = vld [vmem:[%s702_s3 + $0x8] sm:$0xff]  ;;  %v139_v34 = vld [vmem:[%s702_s3 + $0x10] sm:$0xff]  ;;  %v144_v38 = vld [vmem:[%s702_s3 + $0x38] sm:$0xff]  ;;  %v336_v46 = vpack.c.bf16 %v35_v27, %v34_v26 }
   0xa   :  { %327 = vmatprep.subr.bf16.mxu0 %v326_v14  ;;  %v350_v32 = vpack.c.bf16 %v140_v29, %v138_v28  ;;  %v142_v35 = vld [vmem:[%s702_s3 + $0x28] sm:$0xff]  ;;  %v352_v37 = vpack.c.bf16 %v139_v34, %v137_v33  ;;  %v141_v39 = vld [vmem:[%s702_s3 + $0x20] sm:$0xff]  ;;  %v143_v40 = vld [vmem:[%s702_s3 + $0x30] sm:$0xff] }
   0xb   :  { %v53_v41 = vld [vmem:[%s700_s1 + $0xd8] sm:$0xff]  ;;  %v354_v42 = vpack.c.bf16 %v144_v38, %v142_v35  ;;  %v146_v43 = vld [vmem:[%s702_s3 + $0x48] sm:$0xff]  ;;  %v356_v45 = vpack.c.bf16 %v143_v40, %v141_v39  ;;  %v36_v47 = vld [vmem:[%s700_s1 + $0x50] sm:$0xff] }
   0xc   :  { %351 = vmatprep.subr.bf16.mxu1 %v350_v32  ;;  %v148_v44 = vld [vmem:[%s702_s3 + $0x58] sm:$0xff]  ;;  %v145_v49 = vld [vmem:[%s702_s3 + $0x40] sm:$0xff]  ;;  %v147_v50 = vld [vmem:[%s702_s3 + $0x50] sm:$0xff]  ;;  %v338_v51 = vpack.c.bf16 %v53_v41, %v52_v31 }
   0xd   :  { %329 = vmatpush3.bf16.msra.mxu0 %v328_v19  ;;  %353 = vmatpush1.bf16.msra.mxu1 %v352_v37  ;;  %v358_v48 = vpack.c.bf16 %v148_v44, %v146_v43  ;;  %v37_v52 = vld [vmem:[%s700_s1 + $0x58] sm:$0xff]  ;;  %v150_v53 = vld [vmem:[%s702_s3 + $0x68] sm:$0xff]  ;;  %v54_v55 = vld [vmem:[%s700_s1 + $0xe0] sm:$0xff]  ;;  %v360_v57 = vpack.c.bf16 %v147_v50, %v145_v49 }
   0xe   :  { %331 = vmatprep.subr.bf16.mxu0 %v330_v20  ;;  %355 = vmatprep.subr.bf16.mxu1 %v354_v42  ;;  %v152_v54 = vld [vmem:[%s702_s3 + $0x78] sm:$0xff]  ;;  %v55_v56 = vld [vmem:[%s700_s1 + $0xe8] sm:$0xff] }
  0x11   :  { %333 = vmatpush3.bf16.msra.mxu0 %v332_v30  ;;  %357 = vmatpush1.bf16.msra.mxu1 %v356_v45 }
  0x12   :  { %335 = vmatprep.subr.bf16.mxu0 %v334_v36 }
  0x13   :  { %13 = vsyncpa [#allocation5], 0  ;;  %v340_v58 = vpack.c.bf16 %v37_v52, %v36_v47  ;;  %v38_v59 = vld [vmem:[%s700_s1 + $0x60] sm:$0xff]  ;;  %359 = vmatprep.subr.bf16.mxu1 %v358_v48  ;;  %v362_v60 = vpack.c.bf16 %v152_v54, %v150_v53  ;;  %v151_v62 = vld [vmem:[%s702_s3 + $0x70] sm:$0xff]  ;;  %v342_v63 = vpack.c.bf16 %v55_v56, %v54_v55  ;;  %v433_v34 = vmov 0.0   ;;  %s434_s9 = smov [#allocation4]  }
  0x14   :  { %v149_v61 = vld [vmem:[%s702_s3 + $0x60] sm:$0xff]  ;;  %v39_v0 = vld [vmem:[%s700_s1 + $0x68] sm:$0xff]  ;;  %v156_v2 = vld [vmem:[%s702_s3 + $0x98] sm:$0xff]  ;;  %245 = vmatprep.mubr.f32.mxu1 %v433_v34  ;;  %s270_s10 = sshll.u32 %s434_s9, 4  ;;  %s271_s10 = int_to_ptr.vmem [resolvable:$true] %s270_s10 }
  0x15   :  { %337 = vmatpush3.bf16.msra.mxu0 %v336_v46  ;;  %v154_v1 = vld [vmem:[%s702_s3 + $0x88] sm:$0xff]  ;;  %v56_v3 = vld [vmem:[%s700_s1 + $0xf0] sm:$0xff]  ;;  %v57_v4 = vld [vmem:[%s700_s1 + $0xf8] sm:$0xff]  ;;  %361 = vmatpush1.bf16.msra.mxu1 %v360_v57  ;;  %v364_v5 = vpack.c.bf16 %v151_v62, %v149_v61  ;;  %v344_v6 = vpack.c.bf16 %v39_v0, %v38_v59  ;;  %p390_p1 = scmp.lt.s32.totalorder %s271_s10, %s271_s10 }
  0x16   :  { %339 = vmatprep.subr.bf16.mxu0 %v338_v51  ;;  %v40_v7 = vld [vmem:[%s700_s1 + $0x70] sm:$0xff]  ;;  %363 = vmatprep.subr.bf16.mxu1 %v362_v60  ;;  %v366_v8 = vpack.c.bf16 %v156_v2, %v154_v1  ;;  %v153_v9 = vld [vmem:[%s702_s3 + $0x80] sm:$0xff]  ;;  %v346_v11 = vpack.c.bf16 %v57_v4, %v56_v3  ;;  %v41_v12 = vld [vmem:[%s700_s1 + $0x78] sm:$0xff] }
  0x17   :  { %v155_v10 = vld [vmem:[%s702_s3 + $0x90] sm:$0xff]  ;;  %v158_v13 = vld [vmem:[%s702_s3 + $0xa8] sm:$0xff]  ;;  %v160_v14 = vld [vmem:[%s702_s3 + $0xb8] sm:$0xff]  ;;  %v348_v16 = vpack.c.bf16 %v41_v12, %v40_v7 }
  0x18   :  { %v368_v15 = vpack.c.bf16 %v155_v10, %v153_v9  ;;  %v370_v17 = vpack.c.bf16 %v160_v14, %v158_v13  ;;  %v157_v18 = vld [vmem:[%s702_s3 + $0xa0] sm:$0xff]  ;;  %v159_v19 = vld [vmem:[%s702_s3 + $0xb0] sm:$0xff]  ;;  %v162_v22 = vld [vmem:[%s702_s3 + $0xc8] sm:$0xff] }
  0x19   :  { %341 = vmatpush3.bf16.msra.mxu0 %v340_v58  ;;  %365 = vmatpush1.bf16.msra.mxu1 %v364_v5  ;;  %v372_v20 = vpack.c.bf16 %v159_v19, %v157_v18  ;;  %v24_v21 = vld [vmem:[%s699_s0] sm:$0xff]  ;;  %v164_v23 = vld [vmem:[%s702_s3 + $0xd8] sm:$0xff]  ;;  %v163_v26 = vld [vmem:[%s702_s3 + $0xd0] sm:$0xff] }
  0x1a   :  { %343 = vmatprep.subr.bf16.mxu0 %v342_v63  ;;  %367 = vmatprep.subr.bf16.mxu1 %v366_v8  ;;  %v374_v24 = vpack.c.bf16 %v164_v23, %v162_v22  ;;  %v161_v25 = vld [vmem:[%s702_s3 + $0xc0] sm:$0xff]  ;;  %v166_v28 = vld [vmem:[%s702_s3 + $0xe8] sm:$0xff]  ;;  %v168_v29 = vld [vmem:[%s702_s3 + $0xf8] sm:$0xff] }
  0x1b   :  { %v376_v27 = vpack.c.bf16 %v163_v26, %v161_v25  ;;  %v378_v30 = vpack.c.bf16 %v168_v29, %v166_v28  ;;  %v165_v31 = vld [vmem:[%s702_s3 + $0xe0] sm:$0xff]  ;;  %v167_v32 = vld [vmem:[%s702_s3 + $0xf0] sm:$0xff]  ;;  %s385_s3 = scalar_lea.vmem %s271_s10, 128 }
  0x1c   :  { %v380_v33 = vpack.c.bf16 %v167_v32, %v165_v31  ;;  %v282_v36 = vld [vmem:[%s701_s2] ss:$0 sm:$0xff]  ;;  %p386_p0 = scmp.ne.s32.totalorder %s271_s10, %s385_s3  ;;  %p391_p2 = scmp.lt.s32.totalorder %s385_s3, %s385_s3 }
  0x1d   :  { %345 = vmatpush3.bf16.msra.mxu0 %v344_v6  ;;  %369 = vmatpush1.bf16.msra.mxu1 %v368_v15 }
  0x1e   :  { %347 = vmatprep.subr.bf16.mxu0 %v346_v11  ;;  %371 = vmatprep.subr.bf16.mxu1 %v370_v17  ;;  %p392_p3 = por %p391_p2, %p390_p1 }
  0x20   :  { %p393_p4 = pnand %p392_p3, %p386_p0 }
  0x21   :  { %349 = vmatpush3.bf16.msra.mxu0 %v348_v16  ;;  %373 = vmatpush1.bf16.msra.mxu1 %v372_v20 }
  0x22   :  { %375 = vmatprep.subr.bf16.mxu1 %v374_v24 }
  0x24   :  { %130 = vmatmul.mubr.f32.vlgmr.msra.gmra.mrb[0].mxu0 %v24_v21 }
  0x25   :  { %377 = vmatpush1.bf16.msra.mxu1 %v376_v27 }
  0x26   :  { %379 = vmatprep.subr.bf16.mxu1 %v378_v30 }
  0x29   :  { %381 = vmatpush1.bf16.msra.mxu1 %v380_v33 }
  0xf7   :  { %v315_v35 = vpop.f32.mrb[0].mxu0 }
  0xf8   :  { %v316_v37 = vpop.f32.mrb[1].mxu0 }
  0xf9   :  { %v317_v38 = vadd.f32 %v316_v37, %v315_v35 }
  0xfb   :  { %v132_v39 = vadd.f32 %v317_v38, %v282_v36 }
  0xfd   :  { %v135_v40 = vmax.f32 %v132_v39, 0.0 }
  0xff   :  { %136 = vst [vmem:[#allocation4] sm:$0xff] %v135_v40  ;;  %246 = vmatmul.mubr.f32.vlgmr.msra.gmra.mrb[0].mxu1 %v135_v40 }
 0x100   :  { %396 = shalt.err (!%p393_p4)
}
 0x101   :  { %s397_s2 = scalar_lea.hbm %s705_s6, 128 }
 0x102   :  { %p398_p5 = scmp.ne.s32.totalorder %s705_s6, %s397_s2  ;;  %p401_p6 = scmp.lt.u32.totalorder %s397_s2, %s705_s6 }
 0x104   :  { %p403_p7 = pnand %p401_p6, %p398_p5 }
 0x106   :  { %406 = shalt.err (!%p403_p7)
}
 0x107   :  { %273 = dma.vmem_to_hbm [thread:$0]  %s271_s10, 128, %s705_s6, [#allocation5]   ;;  %v171_v41 = vlaneseq  ;;  %v169_v44 = vld [vmem:[%s703_s4] sm:$0x3] }
 0x108   :  { %s435_s20 = smov [#allocation2]  }
 0x109   :  { %v172_v42 = vshrl.u32 %v171_v41, 7  ;;  %s260_s21 = sshll.u32 %s435_s20, 4  ;;  %s261_s21 = int_to_ptr.vmem [resolvable:$true] %s260_s21 }
 0x10a   :  { %s407_s6 = scalar_lea.vmem %s261_s21, 256  ;;  %p412_p9 = scmp.lt.s32.totalorder %s261_s21, %s261_s21 }
 0x10b   :  { %v173_v43 = vsub.s32 0, %v172_v42  ;;  %v177_v45 = vsub.s32 1, %v172_v42  ;;  %p408_p8 = scmp.ne.s32.totalorder %s261_s21, %s407_s6  ;;  %p413_p10 = scmp.lt.s32.totalorder %s407_s6, %s407_s6 }
 0x10d   :  { %v174_v46 = vrot.slane %v169_v44, %v173_v43  ;;  %v178_v47 = vrot.slane %v169_v44, %v177_v45  ;;  %p414_p11 = por %p413_p10, %p412_p9 }
 0x10f   :  { %p415_p12 = pnand %p414_p11, %p408_p8 }
 0x1d2   :  { %v247_v48 = vpop.f32.mrb[0].mxu1 }
 0x1d3   :  { %v248_v49 = vadd.f32 %v247_v48, %v174_v46  ;;  %v249_v50 = vpop.f32.mrb[1].mxu1 }
 0x1d4   :  { %v250_v51 = vadd.f32 %v249_v50, %v178_v47 }
 0x1d5   :  { %252 = vst [vmem:[#allocation2] sm:$0xff] %v248_v49 }
 0x1d6   :  { %253 = vst [vmem:[#allocation2 + $0x8] sm:$0xff] %v250_v51 }
 0x1d7   :  { %418 = shalt.err (!%p415_p12)
}
 0x1d8   :  { %s419_s23 = scalar_lea.hbm %s704_s5, 256 }
 0x1d9   :  { %p420_p13 = scmp.ne.s32.totalorder %s704_s5, %s419_s23  ;;  %p423_p0 = scmp.lt.u32.totalorder %s419_s23, %s704_s5 }
 0x1db   :  { %p425_p1 = pnand %p423_p0, %p420_p13 }
 0x1dd   :  { %428 = shalt.err (!%p425_p1)
}
 0x1de   :  { %263 = dma.vmem_to_hbm [thread:$0]  %s261_s21, 256, %s704_s5, [#allocation3]  }
 0x1df   :  { %429 = dma.done.wait [#allocation3], 256  }
 0x1e0   :  { %430 = vsyncadd [#allocation3], 4294967040 }
 0x1e1   :  { %431 = dma.done.wait [#allocation5], 128  }
 0x1e2   :  { %432 = vsyncadd [#allocation5], 4294967168 }
 0x1e3   :  { %280 = vsyncpa [#allocation3], 1 }
 0x1e4   :  { %281 = vsyncpa [#allocation5], 1 }

</bundles_post_ra>
